<compile_context>
chip_gen: v6e
topology: v6e:2x2x1
jax: 0.10.0
libtpu: 0.0.40
codegen_flags: <defaults>
</compile_context>

<pallas_src>
import functools
import math

import jax
import jax.numpy as jnp
from jax.experimental import pallas as pl
from jax.experimental.pallas import tpu as pltpu


_VMEM_LIMIT_BYTES = 32 * 1024 * 1024      # safe on v5e/v6e (128 MiB) and v7x (64 MiB)
_VMEM_PIPELINE_BUDGET = 20 * 1024 * 1024  # double-buffered x-in + out + pe blocks
_TARGET_X_BLOCK_BYTES = 4 * 1024 * 1024   # ~86%+ of HBM roofline in the tiled-add sweep
_MIN_SPLIT_BYTES = 4 * 1024 * 1024        # only force >=2 grid steps above this size


def _round_up(x: int, m: int) -> int:
    return ((x + m - 1) // m) * m


def _sublane_tile(dtype) -> int:
    # Native sublane packing: 8 rows for 4-byte, 16 for 2-byte, 32 for 1-byte.
    return {4: 8, 2: 16, 1: 32}.get(jnp.dtype(dtype).itemsize, 8)


def make_positional_encoding(d_model: int, max_len: int = 5000,
                             dtype=jnp.float32) -> jnp.ndarray:
    """Deterministic construction of the `pe` buffer, matching PyTorch __init__.

    Returns shape (max_len, 1, d_model) already in the compute dtype, so the
    forward pass never needs a per-call cast of the (large) buffer.  Unlike the
    PyTorch original this also works for odd d_model.
    """
    position = jnp.arange(max_len, dtype=jnp.float32)[:, None]              # (max_len, 1)
    div_term = jnp.exp(
        jnp.arange(0, d_model, 2, dtype=jnp.float32) * (-math.log(10000.0) / d_model)
    )                                                                        # (ceil(d/2),)
    angles = position * div_term                                             # (max_len, ceil(d/2))
    pe = jnp.zeros((max_len, 1, d_model), dtype=jnp.float32)
    pe = pe.at[:, 0, 0::2].set(jnp.sin(angles))
    pe = pe.at[:, 0, 1::2].set(jnp.cos(angles[:, : d_model // 2]))
    return pe.astype(dtype)


def _choose_rows(seq_len: int, x_blk_row_bytes: int, pe_blk_row_bytes: int,
                 min_rows: int) -> int:
    """Pick the seq-row tile so the x block is ~_TARGET_X_BLOCK_BYTES and the
    double-buffered pipeline (2x x-in + 2x out + 2x pe) fits the VMEM budget."""
    per_row = 4 * x_blk_row_bytes + 2 * pe_blk_row_bytes
    ts = min(_TARGET_X_BLOCK_BYTES // max(x_blk_row_bytes, 1),
             _VMEM_PIPELINE_BUDGET // max(per_row, 1))
    ts = max(int(ts), min_rows)
    if ts >= seq_len:
        return seq_len                              # single block: full (legal) dim
    return max(min_rows, (ts // min_rows) * min_rows)


def _ensure_two_steps(seq_len: int, ts: int, lane_blocks: int,
                      total_bytes: int, min_rows: int) -> int:
    """Guarantee >=2 grid steps for large tensors so v7x's 2 TCs both get work."""
    if (lane_blocks * pl.cdiv(seq_len, ts) >= 2
            or total_bytes < _MIN_SPLIT_BYTES
            or seq_len <= min_rows):
        return ts
    half = _round_up(-(-seq_len // 2), min_rows)
    return half if half < seq_len else ts


def _add_pe_lane_dense_kernel(x_ref, pe_ref, o_ref, *, copies: int, d_model: int):
    # x_ref / o_ref: (TS, copies*d_model); pe_ref: (TS, d_model) (or (TS, lane)
    # when copies == 1).  No concatenated pe replica: add per 128-aligned slice.
    pe_tile = pe_ref[...]
    if copies == 1:
        o_ref[...] = x_ref[...] + pe_tile
    else:
        for b in range(copies):
            sl = slice(b * d_model, (b + 1) * d_model)
            o_ref[:, sl] = x_ref[:, sl] + pe_tile


def _add_pe_broadcast_kernel(x_ref, pe_ref, o_ref):
    # x_ref / o_ref: (TS, batch, d_model); pe_ref: (TS, 1, d_model).
    # Broadcast add over the batch (sublane) dim on the VPU.
    o_ref[...] = x_ref[...] + pe_ref[...]


def positional_encoding_forward(x: jnp.ndarray, pe: jnp.ndarray) -> jnp.ndarray:
    """x: (seq_len, batch, d_model); pe: (max_len, 1, d_model) -> x + pe[:seq_len]."""
    seq_len, batch, d_model = x.shape
    max_len = pe.shape[0]
    assert pe.shape == (max_len, 1, d_model)
    assert seq_len <= max_len

    if pe.dtype != x.dtype:
        # Callers should pass pe already in the compute dtype (see
        # make_positional_encoding(dtype=...)); this guard keeps correctness.
        pe = pe.astype(x.dtype)

    itemsize = jnp.dtype(x.dtype).itemsize
    min_rows = _sublane_tile(x.dtype)
    total_bytes = seq_len * batch * d_model * itemsize
    lane_dense = (batch == 1) or (d_model % 128 == 0)

    if lane_dense:
        # Fold batch into the lane axis: contiguous reshape, no data movement.
        W = batch * d_model
        x_in = x.reshape(seq_len, W)
        pe_in = pe.reshape(max_len, d_model)

        x_row_bytes = _round_up(W, 128) * itemsize
        pe_row_bytes = _round_up(d_model, 128) * itemsize

        # Decide whether the lane axis itself must be tiled (very wide rows).
        if (4 * x_row_bytes + 2 * pe_row_bytes) * min_rows > _VMEM_PIPELINE_BUDGET:
            if batch > 1:
                # d_model % 128 == 0 here; keep whole batch copies per block.
                unit_b = d_model * itemsize
                copies_budget = (_VMEM_PIPELINE_BUDGET - 2 * pe_row_bytes * min_rows) \
                    // max(4 * unit_b * min_rows, 1)
                copies_target = _TARGET_X_BLOCK_BYTES // max(unit_b * min_rows, 1)
                copies = int(max(1, min(copies_budget, copies_target, batch)))
                lane_tile = copies * d_model
            else:
                lane_tile = (_VMEM_PIPELINE_BUDGET // (6 * itemsize * min_rows)) // 128 * 128
                lane_tile = int(max(128, min(lane_tile, _round_up(W, 128))))
                if lane_tile >= W:
                    lane_tile = W
        else:
            lane_tile = W
        lane_blocks = pl.cdiv(W, lane_tile)

        if batch > 1:
            copies = lane_tile // d_model
            pe_blk_width = d_model
            pe_index_map = lambda s, l: (s, 0)
        else:
            copies = 1
            pe_blk_width = lane_tile
            pe_index_map = lambda s, l: (s, l)

        x_blk_row_bytes = _round_up(lane_tile, 128) * itemsize
        pe_blk_row_bytes = _round_up(pe_blk_width, 128) * itemsize
        ts = _choose_rows(seq_len, x_blk_row_bytes, pe_blk_row_bytes, min_rows)
        ts = _ensure_two_steps(seq_len, ts, lane_blocks, total_bytes, min_rows)

        kernel = functools.partial(_add_pe_lane_dense_kernel,
                                   copies=copies, d_model=d_model)
        grid = (pl.cdiv(seq_len, ts), lane_blocks)
        in_specs = [
            pl.BlockSpec((ts, lane_tile), lambda s, l: (s, l)),
            pl.BlockSpec((ts, pe_blk_width), pe_index_map),
        ]
        out_specs = pl.BlockSpec((ts, lane_tile), lambda s, l: (s, l))
        out_shape = jax.ShapeDtypeStruct((seq_len, W), x.dtype)
        dim_semantics = ("parallel", "parallel")
    else:
        # Fallback (e.g. d_model=32, batch=2): last two block dims equal the full
        # array dims (always-legal block shape); pe broadcasts over the batch
        # sublane dim in-kernel.  Output last dim < 128 means masked stores; for
        # production-sized tensors prefer a 128-multiple d_model.
        x_in = x
        pe_in = pe
        x_blk_row_bytes = _round_up(batch, 8) * _round_up(d_model, 128) * itemsize
        pe_blk_row_bytes = 8 * _round_up(d_model, 128) * itemsize
        ts = _choose_rows(seq_len, x_blk_row_bytes, pe_blk_row_bytes, min_rows)
        ts = _ensure_two_steps(seq_len, ts, 1, total_bytes, min_rows)

        kernel = _add_pe_broadcast_kernel
        grid = (pl.cdiv(seq_len, ts),)
        in_specs = [
            pl.BlockSpec((ts, batch, d_model), lambda s: (s, 0, 0)),
            pl.BlockSpec((ts, 1, d_model), lambda s: (s, 0, 0)),
        ]
        out_specs = pl.BlockSpec((ts, batch, d_model), lambda s: (s, 0, 0))
        out_shape = jax.ShapeDtypeStruct((seq_len, batch, d_model), x.dtype)
        dim_semantics = ("parallel",)

    out = pl.pallas_call(
        kernel,
        out_shape=out_shape,
        grid_spec=pltpu.PrefetchScalarGridSpec(
            num_scalar_prefetch=0,
            grid=grid,
            in_specs=in_specs,
            out_specs=out_specs,
        ),
        compiler_params=pltpu.CompilerParams(
            dimension_semantics=dim_semantics,
            vmem_limit_bytes=_VMEM_LIMIT_BYTES,
        ),
    )(x_in, pe_in)
    # dropout(p=0) is the identity; nothing more to apply.
    return out.reshape(seq_len, batch, d_model)


if __name__ == "__main__":
    def _check(seq_len, batch, d_model, max_len, key, dtype=jnp.float32):
        x = jax.random.normal(key, (seq_len, batch, d_model), dtype=jnp.float32).astype(dtype)
        pe = make_positional_encoding(d_model, max_len=max_len, dtype=dtype)
        y = jax.block_until_ready(positional_encoding_forward(x, pe))
        y_ref = x + pe[:seq_len]
        assert y.shape == (seq_len, batch, d_model)
        assert jnp.allclose(y.astype(jnp.float32), y_ref.astype(jnp.float32), atol=1e-6), (
            f"mismatch vs reference for shape {(seq_len, batch, d_model)} dtype {dtype}")

    key = jax.random.PRNGKey(0)
    k1, k2, k3, k4 = jax.random.split(key, 4)

    # 1) Small module-implied shape (d_model=32, batch=2 -> sublane-broadcast fallback).
    _check(seq_len=8, batch=2, d_model=32, max_len=64, key=k1)
    # 2) Lane-aligned shape (d_model % 128 == 0 -> lane-dense, per-batch-slice add).
    _check(seq_len=64, batch=2, d_model=128, max_len=128, key=k2)
    # 3) batch == 1, non-128-wide d_model -> lane-dense full-width block.
    _check(seq_len=16, batch=1, d_model=48, max_len=64, key=k3)
    # 4) bf16 activations -> dtype-aware (16-row) sublane tiling.
    _check(seq_len=32, batch=2, d_model=128, max_len=64, key=k4, dtype=jnp.bfloat16)

    print("KERNEL_OK")
</pallas_src>

<mosaic_0001>
module attributes {stable_mosaic.version = 11 : i64} {
  func.func @_add_pe_broadcast_kernel(%arg0: i32, %arg1: memref<8x2x32xf32, #tpu.memory_space<vmem>>, %arg2: memref<8x1x32xf32, #tpu.memory_space<vmem>>, %arg3: memref<8x2x32xf32, #tpu.memory_space<vmem>>) attributes {dimension_semantics = [#tpu.dimension_semantics<parallel>], iteration_bounds = array<i64: 1>, scalar_prefetch = 0 : i64, scratch_operands = 0 : i64, tpu.core_type = #tpu.core_type<tc>, window_params = [{transform_indices = @transform_0, window_bounds = array<i64: 8, 2, 32>}, {transform_indices = @transform_1, window_bounds = array<i64: 8, 1, 32>}, {transform_indices = @transform_2, window_bounds = array<i64: 8, 2, 32>}]} {
    %c0 = arith.constant 0 : index
    %c0_0 = arith.constant 0 : index
    %c0_1 = arith.constant 0 : index
    %0 = vector.load %arg1[%c0, %c0_0, %c0_1] : memref<8x2x32xf32, #tpu.memory_space<vmem>>, vector<8x2x32xf32>
    %c0_2 = arith.constant 0 : index
    %c0_3 = arith.constant 0 : index
    %c0_4 = arith.constant 0 : index
    %1 = vector.load %arg2[%c0_2, %c0_3, %c0_4] : memref<8x1x32xf32, #tpu.memory_space<vmem>>, vector<8x1x32xf32>
    %2 = vector.broadcast %1 : vector<8x1x32xf32> to vector<8x2x32xf32>
    %3 = arith.addf %0, %2 : vector<8x2x32xf32>
    %c0_5 = arith.constant 0 : index
    %c0_6 = arith.constant 0 : index
    %c0_7 = arith.constant 0 : index
    %4 = vector.load %arg3[%c0_5, %c0_6, %c0_7] : memref<8x2x32xf32, #tpu.memory_space<vmem>>, vector<8x2x32xf32>
    tpu.vector_store %arg3[%c0_5, %c0_6, %c0_7], %3 {strides = array<i32>} : memref<8x2x32xf32, #tpu.memory_space<vmem>>, vector<8x2x32xf32>,
    return
  }
  func.func @transform_0(%arg0: i32) -> (i32, i32, i32) {
    %c0_i32 = arith.constant 0 : i32
    %c0_i32_0 = arith.constant 0 : i32
    %c0_i32_1 = arith.constant 0 : i32
    return %arg0, %c0_i32, %c0_i32_0 : i32, i32, i32
  }
  func.func @transform_1(%arg0: i32) -> (i32, i32, i32) {
    %c0_i32 = arith.constant 0 : i32
    %c0_i32_0 = arith.constant 0 : i32
    %c0_i32_1 = arith.constant 0 : i32
    return %arg0, %c0_i32, %c0_i32_0 : i32, i32, i32
  }
  func.func @transform_2(%arg0: i32) -> (i32, i32, i32) {
    %c0_i32 = arith.constant 0 : i32
    %c0_i32_0 = arith.constant 0 : i32
    %c0_i32_1 = arith.constant 0 : i32
    return %arg0, %c0_i32, %c0_i32_0 : i32, i32, i32
  }
}

</mosaic_0001>

<bundles_post_ra>
// kernel: tpu_custom_call.1
= control target key start
LH: loop header
LB: loop body
LE: loop exit
PB: predicated region body
PF: predicated region fallthrough
CT: control target
= control target key end

     0   :  { %vm84_vm0 = vcmask 254976   ;;  %s219_s0 = inlined_call_operand.vmem [shape: f32[8,2,32], index: 0, kind: input, shape index: {}]   ;;  %s220_s1 = inlined_call_operand.vmem [shape: f32[64,1,32], index: 1, kind: input, shape index: {}]   ;;  %s221_s2 = inlined_call_operand.hbm [shape: f32[8,2,32], index: 2, kind: output, shape index: {}]  }
   0x1   :  { %v12_v0 = vld [vmem:[%s219_s0] sm:$0x3]  ;;  %v13_v3 = vld [vmem:[%s219_s0 + $0x2] sm:$0x3]  ;;  %v14_v5 = vld [vmem:[%s219_s0 + $0x4] sm:$0x3] }
   0x2   :  { %v109_v1 = vld [vmem:[%s220_s1] ss:$0 sm:$0xff]  ;;  %v110_v4 = vld [vmem:[%s220_s1 + $0x1] ss:$0 sm:$0xff]  ;;  %v111_v7 = vld [vmem:[%s220_s1 + $0x2] ss:$0 sm:$0xff] }
   0x3   :  { %v76_v2 = vadd.f32 %v109_v1, %v12_v0  ;;  %v77_v6 = vadd.f32 %v110_v4, %v13_v3  ;;  %v15_v8 = vld [vmem:[%s219_s0 + $0x6] sm:$0x3]  ;;  %v112_v9 = vld [vmem:[%s220_s1 + $0x3] ss:$0 sm:$0xff]  ;;  %v78_v10 = vadd.f32 %v111_v7, %v14_v5  ;;  %v16_v12 = vld [vmem:[%s219_s0 + $0x8] sm:$0x3] }
   0x4   :  { %v79_v11 = vadd.f32 %v112_v9, %v15_v8  ;;  %v113_v13 = vld [vmem:[%s220_s1 + $0x4] ss:$0 sm:$0xff]  ;;  %v17_v14 = vld [vmem:[%s219_s0 + $0xa] sm:$0x3]  ;;  %v114_v16 = vld [vmem:[%s220_s1 + $0x5] ss:$0 sm:$0xff] }
   0x5   :  { %85 = vst.msk [vmem:[#allocation2] sm:$0x3] %vm84_vm0, %v76_v2  ;;  %86 = vst.msk [vmem:[#allocation2 + $0x2] sm:$0x3] %vm84_vm0, %v77_v6  ;;  %v80_v15 = vadd.f32 %v113_v13, %v16_v12  ;;  %v18_v17 = vld [vmem:[%s219_s0 + $0xc] sm:$0x3]  ;;  %v81_v19 = vadd.f32 %v114_v16, %v17_v14 }
   0x6   :  { %v115_v18 = vld [vmem:[%s220_s1 + $0x6] ss:$0 sm:$0xff]  ;;  %87 = vst.msk [vmem:[#allocation2 + $0x4] sm:$0x3] %vm84_vm0, %v78_v10  ;;  %88 = vst.msk [vmem:[#allocation2 + $0x6] sm:$0x3] %vm84_vm0, %v79_v11 }
   0x7   :  { %v82_v20 = vadd.f32 %v115_v18, %v18_v17  ;;  %v19_v21 = vld [vmem:[%s219_s0 + $0xe] sm:$0x3]  ;;  %v116_v22 = vld [vmem:[%s220_s1 + $0x7] ss:$0 sm:$0xff] }
   0x8   :  { %7 = vsyncpa [#allocation3], 0  ;;  %89 = vst.msk [vmem:[#allocation2 + $0x8] sm:$0x3] %vm84_vm0, %v80_v15  ;;  %v83_v23 = vadd.f32 %v116_v22, %v19_v21  ;;  %s142_s13 = smov [#allocation2]  }
   0x9   :  { %s98_s14 = sshll.u32 %s142_s13, 4  ;;  %90 = vst.msk [vmem:[#allocation2 + $0xa] sm:$0x3] %vm84_vm0, %v81_v19  ;;  %91 = vst.msk [vmem:[#allocation2 + $0xc] sm:$0x3] %vm84_vm0, %v82_v20  ;;  %s99_s14 = int_to_ptr.vmem [resolvable:$true] %s98_s14 }
   0xa   :  { %92 = vst.msk [vmem:[#allocation2 + $0xe] sm:$0x3] %vm84_vm0, %v83_v23  ;;  %s120_s15 = scalar_lea.vmem %s99_s14, 256  ;;  %p125_p1 = scmp.lt.s32.totalorder %s99_s14, %s99_s14 }
   0xb   :  { %p121_p0 = scmp.ne.s32.totalorder %s99_s14, %s120_s15  ;;  %p126_p2 = scmp.lt.s32.totalorder %s120_s15, %s120_s15 }
   0xd   :  { %p127_p3 = por %p126_p2, %p125_p1 }
   0xf   :  { %p128_p4 = pnand %p127_p3, %p121_p0 }
  0x11   :  { %131 = shalt.err (!%p128_p4)
}
  0x12   :  { %s143_s0 = smov 32   ;;  %s144_s1 = smov 2  }
  0x13   :  { %104 = dma.vmem_to_hbm [thread:$0]  %s99_s14, 256, %s221_s2, [#allocation3], %s143_s0, %s143_s0, %s144_s1  }
  0x14   :  { %140 = dma.done.wait [#allocation3], 256  }
  0x15   :  { %141 = vsyncadd [#allocation3], 4294967040 }
  0x16   :  { %108 = vsyncpa [#allocation3], 1 }

</bundles_post_ra>
